<compile_context>
chip_gen: v7x
topology: tpu7x:2x2x1
jax: 0.10.0
libtpu: 0.0.40
codegen_flags: <defaults>
</compile_context>

<pallas_src>
import functools
import numpy as np
import jax
import jax.numpy as jnp
from jax.experimental import pallas as pl
from jax.experimental.pallas import tpu as pltpu

_SUBLANE = 8   # second-to-last dim alignment target for the node axis


def _round_up(v, m):
    return ((v + m - 1) // m) * m


# ----------------------------------------------------------------------------
# Pallas kernel: fused 2-layer GCN encoder, one head per grid step.
# a:[1,Np,Np] x:[Np,F] w1:[1,F,F] b1:[1,1,F] w2:[1,F,2F] b2:[1,1,2F] -> [1,Np,2F]
# Weights / A / X may be bf16 (compute dtype); biases and accumulators are f32.
# ----------------------------------------------------------------------------
def encoder_kernel(a_ref, x_ref, w1_ref, b1_ref, w2_ref, b2_ref, out_ref):
    cdt = w1_ref.dtype                    # compute dtype (f32 or bf16)
    a = a_ref[0]                          # [Np, Np] normalized adjacency
    x = x_ref[...]                        # [Np, F]

    # layer 1: hidden = relu(A @ (X @ W1) + b1)   (f32 accumulation on MXU)
    xw1 = jnp.dot(x, w1_ref[0], preferred_element_type=jnp.float32)
    h = jnp.dot(a, xw1.astype(cdt), preferred_element_type=jnp.float32) + b1_ref[0]
    h = jnp.maximum(h, 0.0)               # f32 elementwise (VPU)

    # layer 2 (fused mu|logstd): out = A @ (H @ [W2a|W2b]) + [b2a|b2b]
    hw2 = jnp.dot(h.astype(cdt), w2_ref[0], preferred_element_type=jnp.float32)
    out_ref[0] = (jnp.dot(a, hw2.astype(cdt), preferred_element_type=jnp.float32)
                  + b2_ref[0])


def _pallas_encoder(a, x, w1, b1, w2, b2):
    """a:[H,Np,Np] x:[N,F] w1:[H,F,F] b1:[H,1,F] w2:[H,F,2F] b2:[H,1,2F]
    -> out:[H,Np,2F] (f32). One grid step per head; head axis is 'parallel'."""
    num_heads, n_pad, _ = a.shape
    f = w1.shape[1]
    f2 = w2.shape[2]

    x = x.astype(w1.dtype)
    if x.shape[0] < n_pad:
        # Exact: the padded A rows/cols are zero, padded outputs are sliced off.
        x = jnp.zeros((n_pad, f), w1.dtype).at[:x.shape[0], :].set(x)

    return pl.pallas_call(
        encoder_kernel,
        out_shape=jax.ShapeDtypeStruct((num_heads, n_pad, f2), jnp.float32),
        grid=(num_heads,),
        in_specs=[
            pl.BlockSpec((1, n_pad, n_pad), lambda h: (h, 0, 0)),
            pl.BlockSpec((n_pad, f), lambda h: (0, 0)),       # X shared across heads
            pl.BlockSpec((1, f, f), lambda h: (h, 0, 0)),
            pl.BlockSpec((1, 1, f), lambda h: (h, 0, 0)),
            pl.BlockSpec((1, f, f2), lambda h: (h, 0, 0)),
            pl.BlockSpec((1, 1, f2), lambda h: (h, 0, 0)),
        ],
        out_specs=pl.BlockSpec((1, n_pad, f2), lambda h: (h, 0, 0)),
        compiler_params=pltpu.CompilerParams(
            dimension_semantics=("parallel",)),   # both TCs busy on v7x
    )(a, x, w1, b1, w2, b2)


@jax.jit
def _encoder_forward_single(a, x, w1, b1, w2, b2):
    n, f = x.shape
    out = _pallas_encoder(a, x, w1, b1, w2, b2)
    return out[0, :n, :f], out[0, :n, f:2 * f]


@jax.jit
def _encoder_forward_all(a, x, w1, b1, w2, b2):
    n, f = x.shape
    out = _pallas_encoder(a, x, w1, b1, w2, b2)
    return out[:, :n, :f], out[:, :n, f:2 * f]


# ----------------------------------------------------------------------------
# Host-side glue: edge_index -> dense symmetric-normalized adjacency (GCN norm)
# Built once per (head, num_nodes) and cached on device.
# ----------------------------------------------------------------------------
def build_normalized_adjacency_np(edge_index, num_nodes, num_nodes_pad):
    """edge_index: int [2, E], row 0 = src, row 1 = dst (messages src -> dst).
    Returns D^{-1/2}(A+I)D^{-1/2}, zero-padded to [num_nodes_pad]^2."""
    src = np.asarray(edge_index[0], np.int64)
    dst = np.asarray(edge_index[1], np.int64)
    adj = np.zeros((num_nodes_pad, num_nodes_pad), np.float32)
    np.add.at(adj, (dst, src), 1.0)
    idx = np.arange(num_nodes)
    adj[idx, idx] += 1.0                                  # self-loops (real nodes only)
    deg = adj[:num_nodes].sum(axis=1)                     # in-degree incl. self-loop
    d_inv_sqrt = np.zeros(num_nodes_pad, np.float32)
    nz = deg > 0
    d_inv_sqrt[:num_nodes][nz] = 1.0 / np.sqrt(deg[nz])
    return adj * d_inv_sqrt[:, None] * d_inv_sqrt[None, :]


# ----------------------------------------------------------------------------
# Encoder wrapper (mirrors the nn.Module structure)
# ----------------------------------------------------------------------------
class EncoderPallas:
    def __init__(self, feat_dim, head_num, hp_num, key,
                 compute_dtype=jnp.float32):
        self.feat_dim = feat_dim
        self.head_num = head_num
        self.hp_num = hp_num
        self.compute_dtype = compute_dtype

        keys = jax.random.split(key, head_num * 6)
        scale = 1.0 / np.sqrt(feat_dim)
        self.params_raw = []                           # unpadded f32 (reference / regularizers)
        w1_s, b1_s, w2_s, b2_s = [], [], [], []
        for h in range(head_num):
            k = keys[h * 6:(h + 1) * 6]
            w1 = jax.random.normal(k[0], (feat_dim, feat_dim), jnp.float32) * scale
            b1 = jax.random.normal(k[1], (1, feat_dim), jnp.float32) * 0.01
            w2a = jax.random.normal(k[2], (feat_dim, feat_dim), jnp.float32) * scale
            b2a = jax.random.normal(k[3], (1, feat_dim), jnp.float32) * 0.01
            w2b = jax.random.normal(k[4], (feat_dim, feat_dim), jnp.float32) * scale
            b2b = jax.random.normal(k[5], (1, feat_dim), jnp.float32) * 0.01
            self.params_raw.append(
                {"w1": w1, "b1": b1, "w2a": w2a, "b2a": b2a, "w2b": w2b, "b2b": b2b})
            w1_s.append(w1)
            b1_s.append(b1)
            w2_s.append(jnp.concatenate([w2a, w2b], axis=1))   # fused [F, 2F]
            b2_s.append(jnp.concatenate([b2a, b2b], axis=1))   # fused [1, 2F]

        cdt = compute_dtype
        # Stacked, kernel-ready parameters (weights in compute dtype, biases f32).
        self.w1_all = jnp.stack(w1_s).astype(cdt)      # [H, F, F]
        self.b1_all = jnp.stack(b1_s)                  # [H, 1, F]  f32
        self.w2_all = jnp.stack(w2_s).astype(cdt)      # [H, F, 2F]
        self.b2_all = jnp.stack(b2_s)                  # [H, 1, 2F] f32
        # Per-head (1, ...) slices created ONCE so forward(ind) does no
        # per-call parameter slicing on the hot path.
        self._head_params = [
            (self.w1_all[h:h + 1], self.b1_all[h:h + 1],
             self.w2_all[h:h + 1], self.b2_all[h:h + 1])
            for h in range(head_num)]

        self._adj_cache = {}   # (ind|"__all__", num_nodes) -> device adjacency

    # replicate the numpy edge-index construction of Encoder.forward
    def _build_edge_index(self, edge, ind):
        edge_index = np.asarray(edge[ind])
        from_all = np.arange(self.hp_num)
        dest = np.repeat(self.hp_num, self.hp_num)
        return np.hstack((edge_index, np.vstack((from_all, dest)))).astype(np.int64)

    def invalidate_adjacency_cache(self):
        """Call if the `edge` lists change between forwards."""
        self._adj_cache.clear()

    def _adjacency(self, edge, ind, num_nodes):
        n_pad = _round_up(max(num_nodes, _SUBLANE), _SUBLANE)
        cache_key = (ind, num_nodes)
        a = self._adj_cache.get(cache_key)
        if a is None:
            edge_index = self._build_edge_index(edge, ind)
            a_np = build_normalized_adjacency_np(edge_index, num_nodes, n_pad)
            a = jnp.asarray(a_np, dtype=self.compute_dtype)[None]     # [1, Np, Np]
            self._adj_cache[cache_key] = a
        return a

    def _adjacency_all(self, edge, num_nodes):
        n_pad = _round_up(max(num_nodes, _SUBLANE), _SUBLANE)
        cache_key = ("__all__", num_nodes)
        a = self._adj_cache.get(cache_key)
        if a is None:
            mats = [build_normalized_adjacency_np(
                        self._build_edge_index(edge, h), num_nodes, n_pad)
                    for h in range(self.head_num)]
            a = jnp.asarray(np.stack(mats), dtype=self.compute_dtype)  # [H, Np, Np]
            self._adj_cache[cache_key] = a
        return a

    def forward(self, x, edge, ind):
        # `ind` must be a static Python int (selects per-head params), as in the
        # original module.
        n, f = x.shape
        assert f == self.feat_dim
        a = self._adjacency(edge, ind, n)
        w1, b1, w2, b2 = self._head_params[ind]
        return _encoder_forward_single(a, x, w1, b1, w2, b2)

    def forward_all_heads(self, x, edge):
        """All heads in one gridded, pipelined pallas_call (head axis parallel)."""
        n, f = x.shape
        assert f == self.feat_dim
        a = self._adjacency_all(edge, n)
        return _encoder_forward_all(a, x, self.w1_all, self.b1_all,
                                    self.w2_all, self.b2_all)

    def orth_reg_loss(self, ind):
        p = self.params_raw[ind]
        eye = jnp.eye(self.feat_dim, dtype=jnp.float32)
        loss = 0.0
        for w in (p["w1"], p["w2a"], p["w2b"]):
            loss = loss + jnp.abs(jnp.sum(eye - w @ w.T))
        return loss


# ----------------------------------------------------------------------------
# Pure-jnp reference mirroring the kernel's cast structure.  For f32 this is
# exactly the unfused two-GCNConv math.
# ----------------------------------------------------------------------------
def encoder_forward_ref(a, x, p, compute_dtype=jnp.float32):
    cdt = compute_dtype
    a_c = a.astype(cdt)
    x_c = x.astype(cdt)
    w1 = p["w1"].astype(cdt)
    w2 = jnp.concatenate([p["w2a"], p["w2b"]], axis=1).astype(cdt)
    b2 = jnp.concatenate([p["b2a"], p["b2b"]], axis=1)
    f = p["w1"].shape[0]
    xw1 = jnp.dot(x_c, w1, preferred_element_type=jnp.float32)
    h = jnp.maximum(
        jnp.dot(a_c, xw1.astype(cdt), preferred_element_type=jnp.float32) + p["b1"],
        0.0)
    hw2 = jnp.dot(h.astype(cdt), w2, preferred_element_type=jnp.float32)
    out = jnp.dot(a_c, hw2.astype(cdt), preferred_element_type=jnp.float32) + b2
    return out[:, :f], out[:, f:]


if __name__ == "__main__":
    feat_dim = 32
    head_num = 2
    hp_num = 7
    num_nodes = hp_num + 1          # hp nodes + the aggregation node `hp_num`

    key = jax.random.PRNGKey(0)
    k_x, k_params = jax.random.split(key)

    # node features [N, F]
    x = jax.random.normal(k_x, (num_nodes, feat_dim), jnp.float32)

    # per-head edge lists (2 x E int arrays), deterministic
    edge = [
        np.array([[0, 1, 2, 3], [1, 2, 3, 4]], dtype=np.int64),
        np.array([[4, 5, 6, 0], [5, 6, 0, 2]], dtype=np.int64),
    ]
    ind = 1

    # ---- f32 (default) single-head path: strict check vs plain GCN math -----
    enc = EncoderPallas(feat_dim, head_num, hp_num, k_params)
    mu, logstd = enc.forward(x, edge, ind)
    mu = jax.block_until_ready(mu)
    logstd = jax.block_until_ready(logstd)

    # second call exercises the cached-adjacency / no-repacking hot path
    mu2, logstd2 = enc.forward(x, edge, ind)
    jax.block_until_ready(mu2)

    edge_index = enc._build_edge_index(edge, ind)
    a_ref = jnp.asarray(
        build_normalized_adjacency_np(edge_index, num_nodes, num_nodes))
    mu_ref, logstd_ref = encoder_forward_ref(a_ref, x, enc.params_raw[ind])
    np.testing.assert_allclose(np.asarray(mu), np.asarray(mu_ref),
                               rtol=1e-5, atol=1e-5)
    np.testing.assert_allclose(np.asarray(logstd), np.asarray(logstd_ref),
                               rtol=1e-5, atol=1e-5)
    np.testing.assert_allclose(np.asarray(mu2), np.asarray(mu_ref),
                               rtol=1e-5, atol=1e-5)

    # ---- batched all-heads path (one gridded pallas_call, parallel head axis)
    mu_all, logstd_all = enc.forward_all_heads(x, edge)
    jax.block_until_ready(mu_all)
    for h in range(head_num):
        ei_h = enc._build_edge_index(edge, h)
        a_h = jnp.asarray(
            build_normalized_adjacency_np(ei_h, num_nodes, num_nodes))
        mu_h, ls_h = encoder_forward_ref(a_h, x, enc.params_raw[h])
        np.testing.assert_allclose(np.asarray(mu_all[h]), np.asarray(mu_h),
                                   rtol=1e-5, atol=1e-5)
        np.testing.assert_allclose(np.asarray(logstd_all[h]), np.asarray(ls_h),
                                   rtol=1e-5, atol=1e-5)

    # ---- bf16 compute-dtype path (half the weight DMA, 2x MXU on v6e/v7x) ----
    enc_bf16 = EncoderPallas(feat_dim, head_num, hp_num, k_params,
                             compute_dtype=jnp.bfloat16)
    mu_b, logstd_b = enc_bf16.forward(x, edge, ind)
    jax.block_until_ready(mu_b)
    mu_bref, logstd_bref = encoder_forward_ref(
        a_ref, x, enc.params_raw[ind], compute_dtype=jnp.bfloat16)
    np.testing.assert_allclose(np.asarray(mu_b), np.asarray(mu_bref),
                               rtol=5e-2, atol=5e-2)
    np.testing.assert_allclose(np.asarray(logstd_b), np.asarray(logstd_bref),
                               rtol=5e-2, atol=5e-2)

    print("KERNEL_OK")
</pallas_src>

<mosaic_0001>
module attributes {stable_mosaic.version = 11 : i64} {
  func.func @encoder_kernel(%arg0: i32, %arg1: memref<1x8x8xf32, #tpu.memory_space<vmem>>, %arg2: memref<8x32xf32, #tpu.memory_space<vmem>>, %arg3: memref<1x32x32xf32, #tpu.memory_space<vmem>>, %arg4: memref<1x1x32xf32, #tpu.memory_space<vmem>>, %arg5: memref<1x32x64xf32, #tpu.memory_space<vmem>>, %arg6: memref<1x1x64xf32, #tpu.memory_space<vmem>>, %arg7: memref<1x8x64xf32, #tpu.memory_space<vmem>>) attributes {dimension_semantics = [#tpu.dimension_semantics<parallel>], iteration_bounds = array<i64: 1>, scalar_prefetch = 0 : i64, scratch_operands = 0 : i64, tpu.core_type = #tpu.core_type<tc>, window_params = [{transform_indices = @transform_0, window_bounds = array<i64: 1, 8, 8>}, {pipeline_mode = #tpu.pipeline_mode<synchronous>, transform_indices = @transform_1, window_bounds = array<i64: 8, 32>}, {transform_indices = @transform_2, window_bounds = array<i64: 1, 32, 32>}, {transform_indices = @transform_3, window_bounds = array<i64: 1, 1, 32>}, {transform_indices = @transform_4, window_bounds = array<i64: 1, 32, 64>}, {transform_indices = @transform_5, window_bounds = array<i64: 1, 1, 64>}, {transform_indices = @transform_6, window_bounds = array<i64: 1, 8, 64>}]} {
    %c0 = arith.constant 0 : index
    %c0_0 = arith.constant 0 : index
    %c0_1 = arith.constant 0 : index
    %0 = vector.load %arg1[%c0, %c0_0, %c0_1] : memref<1x8x8xf32, #tpu.memory_space<vmem>>, vector<1x8x8xf32>
    %1 = vector.shape_cast %0 : vector<1x8x8xf32> to vector<8x8xf32>
    %c0_2 = arith.constant 0 : index
    %c0_3 = arith.constant 0 : index
    %2 = vector.load %arg2[%c0_2, %c0_3] : memref<8x32xf32, #tpu.memory_space<vmem>>, vector<8x32xf32>
    %c0_4 = arith.constant 0 : index
    %c0_5 = arith.constant 0 : index
    %c0_6 = arith.constant 0 : index
    %3 = vector.load %arg3[%c0_4, %c0_5, %c0_6] : memref<1x32x32xf32, #tpu.memory_space<vmem>>, vector<1x32x32xf32>
    %4 = vector.shape_cast %3 : vector<1x32x32xf32> to vector<32x32xf32>
    %cst = arith.constant dense<0.000000e+00> : vector<8x32xf32>
    %5 = tpu.matmul %2, %4, %cst {dimension_numbers = #tpu.dot_dimension_numbers<[1], [0], [0], [1], [0, 0, 1, 1], [], []>} : vector<8x32xf32>, vector<32x32xf32>, vector<8x32xf32> -> vector<8x32xf32>
    %cst_7 = arith.constant dense<0.000000e+00> : vector<8x32xf32>
    %6 = tpu.matmul %1, %5, %cst_7 {dimension_numbers = #tpu.dot_dimension_numbers<[1], [0], [0], [1], [0, 0, 1, 1], [], []>} : vector<8x8xf32>, vector<8x32xf32>, vector<8x32xf32> -> vector<8x32xf32>
    %c0_8 = arith.constant 0 : index
    %c0_9 = arith.constant 0 : index
    %c0_10 = arith.constant 0 : index
    %7 = vector.load %arg4[%c0_8, %c0_9, %c0_10] : memref<1x1x32xf32, #tpu.memory_space<vmem>>, vector<1x1x32xf32>
    %8 = vector.shape_cast %7 : vector<1x1x32xf32> to vector<1x32xf32>
    %9 = vector.broadcast %8 : vector<1x32xf32> to vector<8x32xf32>
    %10 = arith.addf %6, %9 : vector<8x32xf32>
    %cst_11 = arith.constant 0.000000e+00 : f32
    %11 = vector.broadcast %cst_11 : f32 to vector<8x32xf32>
    %12 = arith.maximumf %10, %11 : vector<8x32xf32>
    %c0_12 = arith.constant 0 : index
    %c0_13 = arith.constant 0 : index
    %c0_14 = arith.constant 0 : index
    %13 = vector.load %arg5[%c0_12, %c0_13, %c0_14] : memref<1x32x64xf32, #tpu.memory_space<vmem>>, vector<1x32x64xf32>
    %14 = vector.shape_cast %13 : vector<1x32x64xf32> to vector<32x64xf32>
    %cst_15 = arith.constant dense<0.000000e+00> : vector<8x64xf32>
    %15 = tpu.matmul %12, %14, %cst_15 {dimension_numbers = #tpu.dot_dimension_numbers<[1], [0], [0], [1], [0, 0, 1, 1], [], []>} : vector<8x32xf32>, vector<32x64xf32>, vector<8x64xf32> -> vector<8x64xf32>
    %cst_16 = arith.constant dense<0.000000e+00> : vector<8x64xf32>
    %16 = tpu.matmul %1, %15, %cst_16 {dimension_numbers = #tpu.dot_dimension_numbers<[1], [0], [0], [1], [0, 0, 1, 1], [], []>} : vector<8x8xf32>, vector<8x64xf32>, vector<8x64xf32> -> vector<8x64xf32>
    %c0_17 = arith.constant 0 : index
    %c0_18 = arith.constant 0 : index
    %c0_19 = arith.constant 0 : index
    %17 = vector.load %arg6[%c0_17, %c0_18, %c0_19] : memref<1x1x64xf32, #tpu.memory_space<vmem>>, vector<1x1x64xf32>
    %18 = vector.shape_cast %17 : vector<1x1x64xf32> to vector<1x64xf32>
    %19 = vector.broadcast %18 : vector<1x64xf32> to vector<8x64xf32>
    %20 = arith.addf %16, %19 : vector<8x64xf32>
    %c0_20 = arith.constant 0 : index
    %c0_21 = arith.constant 0 : index
    %c0_22 = arith.constant 0 : index
    %21 = vector.load %arg7[%c0_20, %c0_21, %c0_22] : memref<1x8x64xf32, #tpu.memory_space<vmem>>, vector<1x8x64xf32>
    %22 = vector.shape_cast %21 : vector<1x8x64xf32> to vector<8x64xf32>
    %23 = vector.shape_cast %20 : vector<8x64xf32> to vector<1x8x64xf32>
    tpu.vector_store %arg7[%c0_20, %c0_21, %c0_22], %23 {strides = array<i32>} : memref<1x8x64xf32, #tpu.memory_space<vmem>>, vector<1x8x64xf32>,
    return
  }
  func.func @transform_0(%arg0: i32) -> (i32, i32, i32) {
    %c0_i32 = arith.constant 0 : i32
    %c0_i32_0 = arith.constant 0 : i32
    %c0_i32_1 = arith.constant 0 : i32
    return %arg0, %c0_i32, %c0_i32_0 : i32, i32, i32
  }
  func.func @transform_1(%arg0: i32) -> (i32, i32) {
    %c0_i32 = arith.constant 0 : i32
    %c0_i32_0 = arith.constant 0 : i32
    %c0_i32_1 = arith.constant 0 : i32
    return %c0_i32, %c0_i32_0 : i32, i32
  }
  func.func @transform_2(%arg0: i32) -> (i32, i32, i32) {
    %c0_i32 = arith.constant 0 : i32
    %c0_i32_0 = arith.constant 0 : i32
    %c0_i32_1 = arith.constant 0 : i32
    return %arg0, %c0_i32, %c0_i32_0 : i32, i32, i32
  }
  func.func @transform_3(%arg0: i32) -> (i32, i32, i32) {
    %c0_i32 = arith.constant 0 : i32
    %c0_i32_0 = arith.constant 0 : i32
    %c0_i32_1 = arith.constant 0 : i32
    return %arg0, %c0_i32, %c0_i32_0 : i32, i32, i32
  }
  func.func @transform_4(%arg0: i32) -> (i32, i32, i32) {
    %c0_i32 = arith.constant 0 : i32
    %c0_i32_0 = arith.constant 0 : i32
    %c0_i32_1 = arith.constant 0 : i32
    return %arg0, %c0_i32, %c0_i32_0 : i32, i32, i32
  }
  func.func @transform_5(%arg0: i32) -> (i32, i32, i32) {
    %c0_i32 = arith.constant 0 : i32
    %c0_i32_0 = arith.constant 0 : i32
    %c0_i32_1 = arith.constant 0 : i32
    return %arg0, %c0_i32, %c0_i32_0 : i32, i32, i32
  }
  func.func @transform_6(%arg0: i32) -> (i32, i32, i32) {
    %c0_i32 = arith.constant 0 : i32
    %c0_i32_0 = arith.constant 0 : i32
    %c0_i32_1 = arith.constant 0 : i32
    return %arg0, %c0_i32, %c0_i32_0 : i32, i32, i32
  }
}

</mosaic_0001>

<bundles_post_ra>
// kernel: _encoder_forward_single.1
= control target key start
LH: loop header
LB: loop body
LE: loop exit
PB: predicated region body
PF: predicated region fallthrough
CT: control target
= control target key end

     0   :  { %11 = vsyncpa [#allocation3], 0  ;;  %s675_s0 = inlined_call_operand.hbm [shape: f32[1,8,8], index: 0, kind: input, shape index: {}]   ;;  %s676_s1 = inlined_call_operand.hbm [shape: f32[8,32], index: 1, kind: input, shape index: {}]   ;;  %s677_s2 = inlined_call_operand.hbm [shape: f32[1,32,32], index: 2, kind: input, shape index: {}]   ;;  %s678_s3 = inlined_call_operand.vmem [shape: f32[1,1,32], index: 3, kind: input, shape index: {}]   ;;  %s679_s4 = inlined_call_operand.hbm [shape: f32[1,32,64], index: 4, kind: input, shape index: {}]   ;;  %s680_s5 = inlined_call_operand.vmem [shape: f32[1,1,64], index: 5, kind: input, shape index: {}]   ;;  %s681_s6 = inlined_call_operand.vmem [shape: f32[1,8,64], index: 6, kind: output, shape index: {}]  }
   0x1   :  { %12 = vsyncpa [#allocation5], 0 }
   0x2   :  { %13 = vsyncpa [#allocation8], 0  ;;  %s566_s21 = smov [#allocation4]   ;;  %s567_s23 = smov [#allocation2]  }
   0x3   :  { %s30_s22 = sshll.u32 %s566_s21, 4  ;;  %s20_s24 = sshll.u32 %s567_s23, 4  ;;  %s31_s22 = int_to_ptr.vmem [resolvable:$true] %s30_s22  ;;  %s21_s24 = int_to_ptr.vmem [resolvable:$true] %s20_s24 }
   0x4   :  { %s472_s27 = scalar_lea.hbm %s676_s1, 128 }
   0x5   :  { %p473_p0 = scmp.ne.s32.totalorder %s676_s1, %s472_s27  ;;  %p476_p1 = scmp.lt.u32.totalorder %s472_s27, %s676_s1 }
   0x7   :  { %p478_p2 = pnand %p476_p1, %p473_p0 }
   0x9   :  { %481 = shalt.err (!%p478_p2)
}
   0xa   :  { %s482_s8 = scalar_lea.vmem %s31_s22, 128  ;;  %p487_p4 = scmp.lt.s32.totalorder %s31_s22, %s31_s22 }
   0xb   :  { %p483_p3 = scmp.ne.s32.totalorder %s31_s22, %s482_s8  ;;  %p488_p5 = scmp.lt.s32.totalorder %s482_s8, %s482_s8 }
   0xd   :  { %p489_p6 = por %p488_p5, %p487_p4 }
   0xf   :  { %p490_p7 = pnand %p489_p6, %p483_p3 }
  0x11   :  { %493 = shalt.err (!%p490_p7)
}
  0x12   :  { %33 = dma.hbm_to_vmem [thread:$0]  %s676_s1, 128, %s31_s22, [#allocation5]  }
  0x13   :  { %s494_s13 = scalar_lea.hbm %s675_s0, 128 }
  0x14   :  { %p495_p8 = scmp.ne.s32.totalorder %s675_s0, %s494_s13  ;;  %p498_p9 = scmp.lt.u32.totalorder %s494_s13, %s675_s0 }
  0x16   :  { %p500_p10 = pnand %p498_p9, %p495_p8 }
  0x18   :  { %503 = shalt.err (!%p500_p10)
}
  0x19   :  { %s504_s18 = scalar_lea.vmem %s21_s24, 128  ;;  %p509_p12 = scmp.lt.s32.totalorder %s21_s24, %s21_s24 }
  0x1a   :  { %p505_p11 = scmp.ne.s32.totalorder %s21_s24, %s504_s18  ;;  %p510_p13 = scmp.lt.s32.totalorder %s504_s18, %s504_s18 }
  0x1c   :  { %p511_p0 = por %p510_p13, %p509_p12 }
  0x1e   :  { %p512_p1 = pnand %p511_p0, %p505_p11 }
  0x20   :  { %515 = shalt.err (!%p512_p1)
}
  0x21   :  { %23 = dma.hbm_to_vmem [thread:$0]  %s675_s0, 128, %s21_s24, [#allocation3]  }
  0x22   :  { %s568_s20 = smov [#allocation6]   ;;  %s516_s25 = scalar_lea.hbm %s677_s2, 512 }
  0x23   :  { %s39_s21 = sshll.u32 %s568_s20, 4  ;;  %p517_p2 = scmp.ne.s32.totalorder %s677_s2, %s516_s25  ;;  %s40_s21 = int_to_ptr.vmem [resolvable:$true] %s39_s21 }
  0x24   :  { %p520_p3 = scmp.lt.u32.totalorder %s516_s25, %s677_s2 }
  0x26   :  { %p522_p4 = pnand %p520_p3, %p517_p2 }
  0x28   :  { %525 = shalt.err (!%p522_p4)
}
  0x29   :  { %s526_s30 = scalar_lea.vmem %s40_s21, 512  ;;  %p531_p6 = scmp.lt.s32.totalorder %s40_s21, %s40_s21 }
  0x2a   :  { %p527_p5 = scmp.ne.s32.totalorder %s40_s21, %s526_s30  ;;  %p532_p7 = scmp.lt.s32.totalorder %s526_s30, %s526_s30 }
  0x2c   :  { %p533_p8 = por %p532_p7, %p531_p6 }
  0x2e   :  { %p534_p9 = pnand %p533_p8, %p527_p5 }
  0x30   :  { %537 = shalt.err (!%p534_p9)
}
  0x31   :  { %s569_s0 = smov 128   ;;  %s570_s24 = smov 8  }
  0x32   :  { %45 = dma.hbm_to_vmem [thread:$0]  %s677_s2, 512, %s40_s21, [#allocation5], %s569_s0, %s569_s0, %s570_s24  }
  0x33   :  { %s571_s9 = smov [#allocation7]   ;;  %s538_s13 = scalar_lea.hbm %s679_s4, 512 }
  0x34   :  { %s53_s10 = sshll.u32 %s571_s9, 4  ;;  %p539_p10 = scmp.ne.s32.totalorder %s679_s4, %s538_s13  ;;  %s54_s10 = int_to_ptr.vmem [resolvable:$true] %s53_s10 }
  0x35   :  { %p542_p11 = scmp.lt.u32.totalorder %s538_s13, %s679_s4 }
  0x37   :  { %p544_p12 = pnand %p542_p11, %p539_p10 }
  0x39   :  { %547 = shalt.err (!%p544_p12)
}
  0x3a   :  { %s548_s18 = scalar_lea.vmem %s54_s10, 512  ;;  %p553_p0 = scmp.lt.s32.totalorder %s54_s10, %s54_s10 }
  0x3b   :  { %p549_p13 = scmp.ne.s32.totalorder %s54_s10, %s548_s18  ;;  %p554_p1 = scmp.lt.s32.totalorder %s548_s18, %s548_s18 }
  0x3d   :  { %p555_p2 = por %p554_p1, %p553_p0 }
  0x3f   :  { %p556_p3 = pnand %p555_p2, %p549_p13 }
  0x41   :  { %559 = shalt.err (!%p556_p3)
}
  0x42   :  { %59 = dma.hbm_to_vmem [thread:$0]  %s679_s4, 512, %s54_s10, [#allocation8], %s569_s0, %s569_s0, %s570_s24  }
  0x43   :  { %560 = dma.done.wait [#allocation3], 128  }
  0x44   :  { %561 = vsyncadd [#allocation3], 4294967168 }
  0x45   :  { %562 = dma.done.wait [#allocation5], 640  }
  0x46   :  { %563 = vsyncadd [#allocation5], 4294966656 }
  0x47   :  { %564 = dma.done.wait [#allocation8], 512  }
  0x48   :  { %565 = vsyncadd [#allocation8], 4294966784  ;;  %v572_v0 = vmov 0.0|0.0   ;;  %vm573_vm0 = vmmov 0   ;;  %v574_v1 = vmov 0.0   ;;  %v76_v2 = vld [vmem:[#allocation6] sm:$0xff] }
  0x49   :  { %451 = vmatprep.subr.bf16.mxu0 %v572_v0  ;;  %427 = vmatprep.mubr.msk.f32.mxu0 %vm573_vm0, %v574_v1  ;;  %v77_v3 = vld [vmem:[#allocation6 + $0x8] sm:$0xff]  ;;  %v78_v4 = vld [vmem:[#allocation6 + $0x10] sm:$0xff]  ;;  %v79_v6 = vld [vmem:[#allocation6 + $0x18] sm:$0xff]  ;;  %vm80_vm1 = vcmask 261120   ;;  %vm161_vm2 = vcmask 64512   ;;  %vm390_vm3 = vcmask 523264  }
  0x4a   :  { %430 = vmatprep.subr.mxu1 %v574_v1  ;;  %432 = vmatprep.mubr.msk.f32.mxu1 %vm573_vm0, %v574_v1  ;;  %v452_v5 = vpack.c.bf16 %v77_v3, %v76_v2  ;;  %v455_v7 = vpack.c.bf16 %v79_v6, %v78_v4  ;;  %v75_v8 = vld [vmem:[#allocation4] sm:$0xff]  ;;  %v236_v9 = vld [vmem:[#allocation7] sm:$0xff]  ;;  %v237_v10 = vld [vmem:[#allocation7 + $0x8] sm:$0xff] }
  0x4b   :  { %v74_v11 = vld [vmem:[#allocation2] sm:$0xff]  ;;  %v458_v12 = vpack.c.bf16 %v237_v10, %v236_v9  ;;  %v239_v16 = vld [vmem:[#allocation7 + $0x18] sm:$0xff]  ;;  %v400_v18 = vld [vmem:[%s678_s3] ss:$0 sm:$0xff] }
  0x4c   :  { %453 = vmatpush3.bf16.msra.mxu0 %v452_v5  ;;  %v238_v15 = vld [vmem:[#allocation7 + $0x10] sm:$0xff]  ;;  %v403_v25 = vld [vmem:[%s680_s5] ss:$0 sm:$0xff] }
  0x4d   :  { %454 = vmatprep.subr.bf16.mxu0 %v572_v0  ;;  %v461_v17 = vpack.c.bf16 %v239_v16, %v238_v15 }
  0x50   :  { %456 = vmatpush3.bf16.msra.mxu0 %v455_v7 }
  0x51   :  { %446 = vmatprep.subr.mxu0 %v574_v1 }
  0x53   :  { %428 = vmatmul.mubr.msk.f32.vlgmr.msra.gmra.mrb[0].mxu0 %vm80_vm1, %v75_v8 }
  0x54   :  { %448 = vmatprep.mubr.msk.f32.mxu0 %vm573_vm0, %v574_v1 }
 0x126   :  { %v150_v13 = vpop.f32.mrb[0].mxu0 }
 0x127   :  { %v429_v14 = vpop.f32.mrb[1].mxu0  ;;  %431 = vmatpush3.msra.mxu1 %v150_v13 }
 0x128   :  { %433 = vmatmul.mubr.msk.f32.vlgmr.msra.gmra.mrb[0].mxu1 %vm161_vm2, %v74_v11  ;;  %457 = vmatprep.subr.bf16.mxu1 %v572_v0 }
 0x129   :  { %459 = vmatpush3.bf16.msra.mxu1 %v458_v12  ;;  %443 = vmatprep.mubr.msk.f32.mxu1 %vm573_vm0, %v574_v1 }
 0x12a   :  { %460 = vmatprep.subr.bf16.mxu1 %v572_v0 }
 0x12d   :  { %462 = vmatpush3.bf16.msra.mxu1 %v461_v17 }
 0x1fb   :  { %v231_v19 = vpop.f32.mrb[0].mxu1 }
 0x1fc   :  { %v232_v20 = vadd.f32 %v400_v18, %v231_v19  ;;  %v434_v21 = vpop.f32.mrb[1].mxu1 }
 0x1fe   :  { %v235_v22 = vmax.f32 %v232_v20, 0.0 }
 0x200   :  { %444 = vmatmul.mubr.msk.f32.vlgmr.msra.gmra.mrb[2].mxu1 %vm80_vm1, %v235_v22 }
 0x2d3   :  { %v309_v23 = vpop.f32.mrb[2].mxu1 }
 0x2d4   :  { %v445_v24 = vpop.f32.mrb[3].mxu1  ;;  %447 = vmatpush3.msra.mxu0 %v309_v23 }
 0x2d5   :  { %449 = vmatmul.mubr.msk.f32.vlgmr.msra.gmra.mrb[2].mxu0 %vm161_vm2, %v74_v11 }
 0x3a8   :  { %v386_v26 = vpop.f32.mrb[2].mxu0 }
 0x3a9   :  { %v387_v27 = vadd.f32 %v403_v25, %v386_v26  ;;  %v450_v28 = vpop.f32.mrb[3].mxu0 }
 0x3ab   :  { %391 = vst.msk [vmem:[%s681_s6] sm:$0xff] %vm390_vm3, %v387_v27 }
 0x3ac   :  { %396 = vsyncpa [#allocation3], 1 }
 0x3ad   :  { %397 = vsyncpa [#allocation5], 1 }
 0x3ae   :  { %398 = vsyncpa [#allocation8], 1 }

</bundles_post_ra>
